<compile_context>
chip_gen: v5e
topology: v5e:2x2
jax: 0.10.0
libtpu: 0.0.40
codegen_flags: <defaults>
</compile_context>

<pallas_src>
import functools
import math

import numpy as np
import jax
import jax.numpy as jnp
from jax.experimental import pallas as pl
from jax.experimental.pallas import tpu as pltpu


def _pconv_kernel(x_ref, w_ref, b_ref, o_ref):
    """One grid step: (tile_n, D_in) @ (D_in, D_out) + bias -> (tile_n, D_out).

    x_ref: (tile_n, C_i*T_i)   dense rows of the input (time fastest)
    w_ref: (C_i*T_i, C_o*T_o)  structured conv weight (shared, resident)
    b_ref: (1, C_o*T_o)        bias replicated along time, f32
    o_ref: (tile_n, C_o*T_o)   lane-dense output rows
    """
    acc = jnp.dot(x_ref[...], w_ref[...], preferred_element_type=jnp.float32)
    o_ref[...] = (acc + b_ref[...]).astype(o_ref.dtype)


def _vmem_capacity_bytes():
    """Physical VMEM of the current chip; conservative fallback if unknown."""
    try:
        info = pltpu.get_tpu_info()
        cap = getattr(info, "vmem_capacity_bytes", None)
        if cap:
            return int(cap)
    except Exception:
        pass
    return 64 << 20  # safe for v5e/v6e/v7x


def _pick_tile_n(n_rows, per_row_bytes, fixed_bytes, budget_bytes, min_steps=4):
    """Row-block size: multiple of 8 (sublane dense), VMEM budgeted, cdiv grid.

    Keeps >= min_steps grid steps when N allows so input prefetch / output
    writeback overlap compute and both v7x TensorCores get work; extra steps
    are nearly free on single-core chips, so no per-generation special case.
    Never shrinks below 8 rows, and never requires tile_n to divide N.
    """
    if n_rows <= 8:
        return n_rows  # full-extent block is always legal
    cap = max(budget_bytes - fixed_bytes, 8 * per_row_bytes) // per_row_bytes
    cap = max(8, (cap // 8) * 8)
    target = max(8, ((-(-n_rows // min_steps)) + 7) // 8 * 8)
    return int(min(cap, target))


def parallel_conv1d(x, weight, bias, *, stride=1, dilation=1, padding=(0, 0),
                    padding_mode="zeros"):
    """JAX/Pallas equivalent of ParallelConv1d.forward.

    x:      (B, V, C_i, T_i)
    weight: (C_o, 1, C_i, K)   (the nn.Conv2d weight layout of the module)
    bias:   (C_o,)
    returns (B, V, C_o, T_o)
    """
    B, V, C_i, T_i = x.shape
    C_o, one, kc, K = weight.shape
    if kc != C_i or one != 1:
        raise ValueError(f"weight shape {weight.shape} inconsistent with C_i={C_i}")
    if padding_mode not in ("zeros", "replicate", "reflection"):
        raise ValueError(f"unsupported padding_mode {padding_mode!r}")

    pad_l, pad_r = padding
    T_pad = T_i + pad_l + pad_r
    T_o = (T_pad - dilation * (K - 1) - 1) // stride + 1
    if T_o <= 0:
        raise ValueError(f"non-positive output length T_o={T_o}")

    N = B * V
    D_in = C_i * T_i
    D_out = C_o * T_o

    # ---- Structured conv weight W2 (trace-time, tiny) --------------------
    # out[n, o, t] = bias[o] + sum_{c,k} w[o,c,k] * x[n, c, src(k, t)]
    # src is the (possibly clamped / reflected) source time index; entries
    # whose tap falls entirely in zero-padding are dropped at trace time.
    entries = []  # (k, t, s)
    for k in range(K):
        for t in range(T_o):
            s = k * dilation + t * stride - pad_l
            if padding_mode == "zeros":
                if s < 0 or s >= T_i:
                    continue
            elif padding_mode == "replicate":
                s = min(max(s, 0), T_i - 1)
            else:  # reflection
                if s < 0:
                    s = -s
                elif s >= T_i:
                    s = 2 * (T_i - 1) - s
            entries.append((k, t, s))

    ks = np.array([e[0] for e in entries], dtype=np.int32)
    ts = np.array([e[1] for e in entries], dtype=np.int32)
    ss = np.array([e[2] for e in entries], dtype=np.int32)
    row_idx = ss[:, None] + np.arange(C_i, dtype=np.int32)[None, :] * T_i  # (E, C_i)
    col_idx = ts[:, None] + np.arange(C_o, dtype=np.int32)[None, :] * T_o  # (E, C_o)

    w_kco = jnp.transpose(weight[:, 0], (2, 1, 0))            # (K, C_i, C_o)
    vals = w_kco[ks].astype(jnp.float32)                       # (E, C_i, C_o)
    w2 = jnp.zeros((D_in, D_out), jnp.float32)
    w2 = w2.at[row_idx[:, :, None], col_idx[:, None, :]].add(vals)
    w2 = w2.astype(x.dtype)
    b2 = jnp.repeat(bias.astype(jnp.float32), T_o).reshape(1, D_out)

    # Free reshapes: no HBM transpose / padded copy of x or out.
    x2 = x.reshape(N, D_in)

    # ---- Tiling (generation-aware VMEM budget, cdiv grid) ----------------
    isz = x.dtype.itemsize
    lane = 128
    d_in_p = -(-D_in // lane) * lane
    d_out_p = -(-D_out // lane) * lane
    cap = _vmem_capacity_bytes()
    vmem_limit = int(min((cap * 3) // 4, 96 << 20))   # ~48 MiB on v7x, 96 MiB on v5e/v6e
    tile_budget = cap // 4                            # ~16 MiB on v7x, 32 MiB on v5e/v6e
    fixed = 2 * (-(-D_in // 8) * 8) * d_out_p * isz + 2 * d_out_p * 4 + (1 << 20)
    per_row = (d_in_p + d_out_p) * isz * 2 + d_out_p * 4   # dbl-buffered blocks + f32 acc
    tile_n = _pick_tile_n(N, per_row, fixed, tile_budget)
    grid = (pl.cdiv(N, tile_n),)

    flops = 2 * N * D_in * D_out + N * D_out
    bytes_accessed = N * (D_in + D_out) * isz + D_in * D_out * isz + D_out * 4

    out2 = pl.pallas_call(
        _pconv_kernel,
        out_shape=jax.ShapeDtypeStruct((N, D_out), x.dtype),
        grid_spec=pltpu.PrefetchScalarGridSpec(
            num_scalar_prefetch=0,
            grid=grid,
            in_specs=[
                pl.BlockSpec((tile_n, D_in), lambda i: (i, 0)),
                pl.BlockSpec((D_in, D_out), lambda i: (0, 0)),   # resident, DMA'd once
                pl.BlockSpec((1, D_out), lambda i: (0, 0)),      # resident, DMA'd once
            ],
            out_specs=pl.BlockSpec((tile_n, D_out), lambda i: (i, 0)),
        ),
        compiler_params=pltpu.CompilerParams(
            dimension_semantics=("parallel",),
            vmem_limit_bytes=vmem_limit,
        ),
        cost_estimate=pl.CostEstimate(
            flops=int(flops), transcendentals=0,
            bytes_accessed=int(bytes_accessed)),
    )(x2, w2, b2)

    # Pure reshape: (N, C_o*T_o) -> (B, V, C_o, T_o).
    return out2.reshape(B, V, C_o, T_o)


def _ref_forward(x, weight, bias, stride, dilation, padding, padding_mode="zeros"):
    """Pure-JAX reference of the PyTorch forward."""
    mode = {"zeros": "constant", "replicate": "edge", "reflection": "reflect"}[padding_mode]
    xp = jnp.pad(x, ((0, 0), (0, 0), (0, 0), padding), mode=mode)
    K = weight.shape[-1]
    T_pad = xp.shape[-1]
    T_o = (T_pad - dilation * (K - 1) - 1) // stride + 1
    out = jnp.zeros((x.shape[0], x.shape[1], weight.shape[0], T_o), jnp.float32)
    for k in range(K):
        sl = xp[..., k * dilation: k * dilation + (T_o - 1) * stride + 1: stride]
        out = out + jnp.einsum("bvct,oc->bvot", sl, weight[:, 0, :, k])
    return out + bias[None, None, :, None]


# TODO(synk): param_norm='weight'/'spectral' (weight_norm / spectral_norm
# reparameterizations) are init-time weight transforms with no kernel-side
# equivalent; only the default param_norm=None forward path is implemented.

if __name__ == "__main__":
    B, V, C_i, T_i = 2, 4, 4, 16
    C_o, K = 8, 3

    key = jax.random.PRNGKey(0)
    kx, kw, kb = jax.random.split(key, 3)

    x = jax.random.normal(kx, (B, V, C_i, T_i), dtype=jnp.float32)

    # Deterministic Conv2d-style init: U(-1/sqrt(fan_in), 1/sqrt(fan_in)).
    fan_in = 1 * C_i * K
    bound = 1.0 / math.sqrt(fan_in)
    weight = jax.random.uniform(kw, (C_o, 1, C_i, K), jnp.float32, -bound, bound)
    bias = jax.random.uniform(kb, (C_o,), jnp.float32, -bound, bound)

    configs = [
        dict(stride=1, dilation=1, padding=(1, 1), padding_mode="zeros"),
        dict(stride=1, dilation=2, padding=(2, 1), padding_mode="zeros"),
        dict(stride=2, dilation=1, padding=(1, 1), padding_mode="zeros"),
        dict(stride=1, dilation=1, padding=(2, 2), padding_mode="replicate"),
        dict(stride=1, dilation=1, padding=(1, 1), padding_mode="reflection"),
    ]
    for cfg in configs:
        out = parallel_conv1d(x, weight, bias, **cfg)
        out = jax.block_until_ready(out)

        T_o = (T_i + sum(cfg["padding"]) - cfg["dilation"] * (K - 1) - 1) \
            // cfg["stride"] + 1
        assert out.shape == (B, V, C_o, T_o), out.shape

        ref = _ref_forward(x, weight, bias, cfg["stride"], cfg["dilation"],
                           cfg["padding"], cfg["padding_mode"])
        np.testing.assert_allclose(np.asarray(out), np.asarray(ref),
                                   rtol=1e-5, atol=1e-5)

    print("KERNEL_OK")
</pallas_src>

<mosaic_0001>
module attributes {stable_mosaic.version = 11 : i64} {
  func.func @_pconv_kernel(%arg0: i32, %arg1: memref<8x64xf32, #tpu.memory_space<vmem>>, %arg2: memref<64x128xf32, #tpu.memory_space<vmem>>, %arg3: memref<1x128xf32, #tpu.memory_space<vmem>>, %arg4: memref<8x128xf32, #tpu.memory_space<vmem>>) attributes {dimension_semantics = [#tpu.dimension_semantics<parallel>], iteration_bounds = array<i64: 1>, scalar_prefetch = 0 : i64, scratch_operands = 0 : i64, tpu.core_type = #tpu.core_type<tc>, window_params = [{transform_indices = @transform_0, window_bounds = array<i64: 8, 64>}, {pipeline_mode = #tpu.pipeline_mode<synchronous>, transform_indices = @transform_1, window_bounds = array<i64: 64, 128>}, {pipeline_mode = #tpu.pipeline_mode<synchronous>, transform_indices = @transform_2, window_bounds = array<i64: 1, 128>}, {transform_indices = @transform_3, window_bounds = array<i64: 8, 128>}]} {
    %c0 = arith.constant 0 : index
    %c0_0 = arith.constant 0 : index
    %0 = vector.load %arg1[%c0, %c0_0] : memref<8x64xf32, #tpu.memory_space<vmem>>, vector<8x64xf32>
    %c0_1 = arith.constant 0 : index
    %c0_2 = arith.constant 0 : index
    %1 = vector.load %arg2[%c0_1, %c0_2] : memref<64x128xf32, #tpu.memory_space<vmem>>, vector<64x128xf32>
    %cst = arith.constant dense<0.000000e+00> : vector<8x128xf32>
    %2 = tpu.matmul %0, %1, %cst {dimension_numbers = #tpu.dot_dimension_numbers<[1], [0], [0], [1], [0, 0, 1, 1], [], []>} : vector<8x64xf32>, vector<64x128xf32>, vector<8x128xf32> -> vector<8x128xf32>
    %c0_3 = arith.constant 0 : index
    %c0_4 = arith.constant 0 : index
    %3 = vector.load %arg3[%c0_3, %c0_4] : memref<1x128xf32, #tpu.memory_space<vmem>>, vector<1x128xf32>
    %4 = vector.broadcast %3 : vector<1x128xf32> to vector<8x128xf32>
    %5 = arith.addf %2, %4 : vector<8x128xf32>
    %c0_5 = arith.constant 0 : index
    %c0_6 = arith.constant 0 : index
    %6 = vector.load %arg4[%c0_5, %c0_6] : memref<8x128xf32, #tpu.memory_space<vmem>>, vector<8x128xf32>
    tpu.vector_store %arg4[%c0_5, %c0_6], %5 {strides = array<i32>} : memref<8x128xf32, #tpu.memory_space<vmem>>, vector<8x128xf32>,
    return
  }
  func.func @transform_0(%arg0: i32) -> (i32, i32) {
    %c0_i32 = arith.constant 0 : i32
    %c0_i32_0 = arith.constant 0 : i32
    return %arg0, %c0_i32 : i32, i32
  }
  func.func @transform_1(%arg0: i32) -> (i32, i32) {
    %c0_i32 = arith.constant 0 : i32
    %c0_i32_0 = arith.constant 0 : i32
    %c0_i32_1 = arith.constant 0 : i32
    return %c0_i32, %c0_i32_0 : i32, i32
  }
  func.func @transform_2(%arg0: i32) -> (i32, i32) {
    %c0_i32 = arith.constant 0 : i32
    %c0_i32_0 = arith.constant 0 : i32
    %c0_i32_1 = arith.constant 0 : i32
    return %c0_i32, %c0_i32_0 : i32, i32
  }
  func.func @transform_3(%arg0: i32) -> (i32, i32) {
    %c0_i32 = arith.constant 0 : i32
    %c0_i32_0 = arith.constant 0 : i32
    return %arg0, %c0_i32 : i32, i32
  }
}

</mosaic_0001>

<bundles_post_ra>
// kernel: tpu_custom_call.1
= control target key start
LH: loop header
LB: loop body
LE: loop exit
PB: predicated region body
PF: predicated region fallthrough
CT: control target
= control target key end

     0   :  { %8 = vsyncpa [#allocation3], 0  ;;  %s223_s0 = inlined_call_operand.hbm [shape: f32[8,64], index: 0, kind: input, shape index: {}]   ;;  %s224_s1 = inlined_call_operand.hbm [shape: f32[64,128], index: 1, kind: input, shape index: {}]   ;;  %s225_s2 = inlined_call_operand.vmem [shape: f32[1,128], index: 2, kind: input, shape index: {}]   ;;  %s226_s3 = inlined_call_operand.hbm [shape: f32[8,128], index: 3, kind: output, shape index: {}]  }
   0x1   :  { %9 = vsyncpa [#allocation6], 0 }
   0x2   :  { %10 = vsyncpa [#allocation4], 0  ;;  %s16_s14 = sshll.u32 %s223_s0, 4  ;;  %s186_s15 = smov [#allocation2]   ;;  %s17_s14 = int_to_ptr.hbm [resolvable:$true] %s16_s14 }
   0x3   :  { %s18_s16 = sshll.u32 %s186_s15, 4  ;;  %s26_s19 = sshll.u32 %s224_s1, 4  ;;  %s19_s16 = int_to_ptr.vmem [resolvable:$true] %s18_s16  ;;  %s27_s19 = int_to_ptr.hbm [resolvable:$true] %s26_s19 }
   0x4   :  { %21 = dma.hbm_to_vmem [thread:$0]  %s17_s14, 128, %s19_s16, [#allocation3]  }
   0x5   :  { %s187_s20 = smov [#allocation5]   ;;  %s188_s22 = smov 128  }
   0x6   :  { %s28_s21 = sshll.u32 %s187_s20, 4  ;;  %s189_s23 = smov 8   ;;  %s29_s21 = int_to_ptr.vmem [resolvable:$true] %s28_s21 }
   0x7   :  { %34 = dma.hbm_to_vmem [thread:$0]  %s27_s19, 1024, %s29_s21, [#allocation6], %s188_s22, %s188_s22, %s189_s23  }
   0x8   :  { %180 = dma.done.wait [#allocation3], 128  }
   0x9   :  { %181 = vsyncadd [#allocation3], 4294967168 }
   0xa   :  { %182 = dma.done.wait [#allocation6], 1024  }
   0xb   :  { %183 = vsyncadd [#allocation6], 4294966272  ;;  %v53_v0 = vld [vmem:[#allocation5 + $0x38] sm:$0xff]  ;;  %v52_v1 = vld [vmem:[#allocation5 + $0x30] sm:$0xff]  ;;  %vm58_vm0 = vcmask 523264   ;;  %s190_s24 = smov [#allocation7]  }
   0xc   :  { %70 = vmatpush.msra.mxu0 %v53_v0  ;;  %v51_v2 = vld [vmem:[#allocation5 + $0x28] sm:$0xff]  ;;  %v50_v3 = vld [vmem:[#allocation5 + $0x20] sm:$0xff]  ;;  %v49_v4 = vld [vmem:[#allocation5 + $0x18] sm:$0xff]  ;;  %s88_s25 = sshll.u32 %s190_s24, 4  ;;  %s90_s28 = sshll.u32 %s226_s3, 4  ;;  %s89_s25 = int_to_ptr.vmem [resolvable:$true] %s88_s25  ;;  %s91_s28 = int_to_ptr.hbm [resolvable:$true] %s90_s28 }
   0xd   :  { %v48_v5 = vld [vmem:[#allocation5 + $0x10] sm:$0xff]  ;;  %v47_v6 = vld [vmem:[#allocation5 + $0x8] sm:$0xff]  ;;  %v46_v7 = vld [vmem:[#allocation5] sm:$0xff] }
   0xe   :  { %71 = vmatpush.msra.mxu0 %v52_v1  ;;  %v45_v8 = vld [vmem:[#allocation2] sm:$0xff] }
   0xf   :  { %v107_v9 = vld [vmem:[%s225_s2] ss:$0 sm:$0xff] }
  0x10   :  { %72 = vmatpush.msra.mxu0 %v51_v2 }
  0x12   :  { %73 = vmatpush.msra.mxu0 %v50_v3 }
  0x14   :  { %74 = vmatpush.msra.mxu0 %v49_v4 }
  0x16   :  { %75 = vmatpush.msra.mxu0 %v48_v5 }
  0x18   :  { %76 = vmatpush.msra.mxu0 %v47_v6 }
  0x1a   :  { %77 = vmatpush.msra.mxu0 %v46_v7 }
  0x1b   :  { %101 = vmatmul.msk.f32.vlgmr.msra.gmra.mxu0 %vm58_vm0, %v45_v8 }
  0x98   :  { %v79_v10 = vpop.f32.mrf.mxu0 }
  0x99   :  { %v80_v11 = vadd.f32 %v107_v9, %v79_v10 }
  0x9b   :  { %82 = vst [vmem:[#allocation7] sm:$0xff] %v80_v11 }
  0x9c   :  { %93 = dma.vmem_to_hbm [thread:$0]  %s89_s25, 128, %s91_s28, [#allocation4]  }
  0x9d   :  { %184 = dma.done.wait [#allocation4], 128  }
  0x9e   :  { %185 = vsyncadd [#allocation4], 4294967168 }
  0x9f   :  { %98 = vsyncpa [#allocation3], 1 }
  0xa0   :  { %99 = vsyncpa [#allocation6], 1 }
  0xa1   :  { %100 = vsyncpa [#allocation4], 1 }

</bundles_post_ra>
